<compile_context>
chip_gen: v5e
topology: v5e:2x2
jax: 0.10.0
libtpu: 0.0.40
codegen_flags: <defaults>
</compile_context>

<pallas_src>
import jax
import jax.numpy as jnp
from jax.experimental import pallas as pl
from jax.experimental.pallas import tpu as pltpu


# ----------------------------------------------------------------------------
# Single fused kernel: interpolation + antithetic MLP pair + per-sample loss
# ----------------------------------------------------------------------------
def fused_velocity_loss_kernel(x0_ref, x1_ref, z_ref, sc_ref,
                               w0_ref, w1_ref, wt_ref, wb0_ref, wb1_ref,
                               bias1_ref, w2_ref, bias2_ref, out_ref):
    tb = x0_ref.shape[0]                       # batch-tile rows (static, multiple of 8)
    hdim = w0_ref.shape[1]
    mdt = w0_ref.dtype                         # MXU operand dtype (bf16 in production)
    f32 = jnp.float32

    x0 = x0_ref[...]                           # (TB, D) f32
    x1 = x1_ref[...]
    z = z_ref[...]
    sc = sc_ref[...]                           # (TB, 3) packed = [t, beta0, beta1]
    t = sc[:, 0:1]
    b0 = sc[:, 1:2]
    b1 = sc[:, 2:3]

    # --- interpolation scalars, computed once per tile (shared by +/- branches) ---
    c = jax.lax.rsqrt(0.5 * (b0 + b1))         # (TB, 1)
    gz = (t * (1.0 - t) * c) * z               # g(t)  * c * z   (TB, D)
    gdz = ((1.0 - 2.0 * t) * c) * z            # g'(t) * c * z   (TB, D)

    base = (1.0 - t) * x0 + t * x1             # (TB, D)
    vel = x1 - x0

    # --- antithetic pair stacked on the sublane axis: one MXU matmul, 2x row util ---
    xt = jnp.concatenate([base + gz, base - gz], axis=0).astype(mdt)    # (2TB, D)

    # --- shared affine part of the hidden layer, computed once (f32 accumulation) ---
    shared = jnp.dot(x0.astype(mdt), w0_ref[...], preferred_element_type=f32)
    shared = (shared
              + t * wt_ref[...]
              + b0 * wb0_ref[...]
              + b1 * wb1_ref[...]
              + bias1_ref[...])                                          # (TB, H)

    h = jnp.dot(xt, w1_ref[...], preferred_element_type=f32)            # (2TB, H)
    h = h.reshape(2, tb, hdim) + shared[None]      # broadcast add, no (2TB,H) dup
    h = jnp.tanh(h).astype(mdt).reshape(2 * tb, hdim)

    bvel = jnp.dot(h, w2_ref[...], preferred_element_type=f32)
    bvel = bvel + bias2_ref[...]                                         # (2TB, D) f32

    bp = bvel[:tb]
    bm = bvel[tb:]
    # velocity-matching loss via linearity: dI+/- are never materialized
    l = 0.25 * (bp * bp + bm * bm) - 0.5 * (vel * (bp + bm) + gdz * (bp - bm))
    # TODO(synk): output kept as a lane-sparse (TB, 1) column so tile_b only needs to be
    #             a multiple of 8; lane-dense layout would require tile_b % 128 == 0.
    out_ref[...] = jnp.sum(l, axis=1, keepdims=True)                     # (TB, 1)


# ----------------------------------------------------------------------------
# wrapper helpers
# ----------------------------------------------------------------------------
def _tpu_vmem_capacity():
    try:
        return int(pltpu.get_tpu_info().vmem_capacity_bytes)
    except Exception:
        return 128 << 20  # v5e/v6e-class default


def _pick_tile_b(B, small_vmem):
    cap = 128 if small_vmem else 256
    if B <= cap:
        # v7x has 2 TensorCores per chip: split a mid-size batch so both get work.
        if small_vmem and B >= 16 and B % 16 == 0:
            return B // 2
        return B
    if B % cap == 0:
        return cap
    for t in range(cap, 7, -8):        # largest 8-multiple divisor of B that is <= cap
        if B % t == 0:
            return t
    return B  # TODO(synk): pad/mask for batches with no 8-multiple divisor


def _vmem_limit_bytes(tile_b, D, H, mxu_itemsize, vmem_cap):
    weights = (2 * D * H + H * D) * mxu_itemsize + (4 * H + D) * 4
    io = 2 * (3 * tile_b * D + 3 * tile_b + tile_b) * 4       # double-buffered in/out tiles
    interm = ((2 * tile_b * D) * mxu_itemsize                 # stacked xt
              + (tile_b * H) * 4                              # shared
              + (2 * tile_b * H) * (4 + mxu_itemsize)         # h (f32 + mxu-dtype copy)
              + (2 * tile_b * D) * 4                          # bvel
              + (6 * tile_b * D) * 4)                         # base/vel/gz/gdz/loss temps
    est = 2 * (weights + io + interm) + (2 << 20)             # 2x headroom + slack
    return int(max(32 << 20, min(est, int(vmem_cap * 0.9))))


def _invariant_spec(shape, single_buffer):
    """Grid-invariant (weight) block: same (0,..,0) block every step."""
    idx = lambda i: (0,) * len(shape)
    if single_buffer:
        try:
            # no point double-buffering an invariant operand — halve its VMEM footprint
            return pl.BlockSpec(shape, idx, pipeline_mode=pl.Buffered(1))
        except Exception:
            pass  # older jax without pipeline_mode — fall back to default buffering
    return pl.BlockSpec(shape, idx)


# ----------------------------------------------------------------------------
# forward() of BaseVelocityLoss
# ----------------------------------------------------------------------------
def base_velocity_loss_forward(params, x0s, x1s, beta0s, beta1s, ts, zs,
                               *, tile_b=None, mxu_dtype=jnp.bfloat16):
    B, D = x0s.shape
    H = params["w0"].shape[1]

    vmem_cap = _tpu_vmem_capacity()
    small_vmem = vmem_cap <= (64 << 20)          # v7x-class TensorCore
    if tile_b is None:
        tile_b = _pick_tile_b(B, small_vmem)
    assert B % tile_b == 0 and (tile_b % 8 == 0 or tile_b == B), \
        "batch tile must divide B and be a multiple of 8 (or the whole batch)"
    nb = B // tile_b

    # MXU operands in bf16 (weights cast once here); VPU/loss math stays f32.
    # Pass mxu_dtype=jnp.float32 for exact f32 semantics.
    w0 = params["w0"].astype(mxu_dtype)
    w1 = params["w1"].astype(mxu_dtype)
    w2 = params["w2"].astype(mxu_dtype)
    itemsize = jnp.dtype(mxu_dtype).itemsize

    # t / beta0 / beta1 packed into one (B, 3): one small DMA per grid step, not three.
    sc = jnp.concatenate([ts, beta0s, beta1s], axis=1).astype(jnp.float32)

    single_buf_weights = (2 * D * H + H * D) * itemsize > (4 << 20)

    bd = pl.BlockSpec((tile_b, D), lambda i: (i, 0))
    bsc = pl.BlockSpec((tile_b, 3), lambda i: (i, 0))
    wdh = _invariant_spec((D, H), single_buf_weights)
    whd = _invariant_spec((H, D), single_buf_weights)
    r1h = _invariant_spec((1, H), single_buf_weights)
    r1d = _invariant_spec((1, D), single_buf_weights)

    per_sample = pl.pallas_call(
        fused_velocity_loss_kernel,
        grid=(nb,),
        in_specs=[bd, bd, bd, bsc,
                  wdh, wdh, r1h, r1h, r1h, r1h, whd, r1d],
        out_specs=pl.BlockSpec((tile_b, 1), lambda i: (i, 0)),
        out_shape=jax.ShapeDtypeStruct((B, 1), jnp.float32),
        compiler_params=pltpu.CompilerParams(
            dimension_semantics=("parallel",),       # independent batch tiles
            vmem_limit_bytes=_vmem_limit_bytes(tile_b, D, H, itemsize, vmem_cap)),
    )(x0s, x1s, zs, sc,
      w0, w1, params["wt"], params["wb0"], params["wb1"],
      params["bias1"], w2, params["bias2"])

    # loss_fn(...).mean() — tiny (B,)-element reduction done wrapper-side
    return jnp.mean(per_sample)


# ----------------------------------------------------------------------------
# pure-JAX reference (same bf16 MXU operands, f32 accumulation) for correctness
# ----------------------------------------------------------------------------
def reference_forward(params, x0s, x1s, beta0s, beta1s, ts, zs, mxu_dtype=jnp.bfloat16):
    f32 = jnp.float32
    c = jax.lax.rsqrt(0.5 * (beta0s + beta1s))
    g = ts * (1.0 - ts) * c
    gdot = (1.0 - 2.0 * ts) * c
    base = (1.0 - ts) * x0s + ts * x1s
    vel = x1s - x0s
    xtp, xtm = base + g * zs, base - g * zs
    dtp, dtm = vel + gdot * zs, vel - gdot * zs

    w0 = params["w0"].astype(mxu_dtype)
    w1 = params["w1"].astype(mxu_dtype)
    w2 = params["w2"].astype(mxu_dtype)

    def bfun(xt):
        h = (jnp.dot(x0s.astype(mxu_dtype), w0, preferred_element_type=f32)
             + jnp.dot(xt.astype(mxu_dtype), w1, preferred_element_type=f32)
             + ts * params["wt"] + beta0s * params["wb0"] + beta1s * params["wb1"]
             + params["bias1"])
        h = jnp.tanh(h)
        return jnp.dot(h.astype(mxu_dtype), w2, preferred_element_type=f32) + params["bias2"]

    btp, btm = bfun(xtp), bfun(xtm)
    lp = jnp.sum(0.5 * btp * btp - dtp * btp, axis=-1)
    lm = jnp.sum(0.5 * btm * btm - dtm * btm, axis=-1)
    return jnp.mean(0.5 * (lp + lm))


if __name__ == "__main__":
    B, D, H = 8, 128, 128

    key = jax.random.PRNGKey(0)
    keys = jax.random.split(key, 12)

    # inputs to forward(b, x0s, x1s, beta0s, beta1s)
    x0s = jax.random.normal(keys[0], (B, D), jnp.float32)
    x1s = jax.random.normal(keys[1], (B, D), jnp.float32)
    beta0s = jax.random.uniform(keys[2], (B, 1), jnp.float32, 0.5, 2.0)
    beta1s = jax.random.uniform(keys[3], (B, 1), jnp.float32, 0.5, 2.0)

    # randomness produced by get_interpolated_batch (drawn once, deterministic)
    ts = jax.random.uniform(keys[4], (B, 1), jnp.float32, 0.05, 0.95)
    zs = jax.random.normal(keys[5], (B, D), jnp.float32)

    # deterministic weights of the velocity model b
    params = {
        "w0": jax.random.normal(keys[6], (D, H), jnp.float32) / jnp.sqrt(D),
        "w1": jax.random.normal(keys[7], (D, H), jnp.float32) / jnp.sqrt(D),
        "wt": jax.random.normal(keys[8], (1, H), jnp.float32),
        "wb0": jax.random.normal(keys[9], (1, H), jnp.float32),
        "wb1": jax.random.normal(keys[10], (1, H), jnp.float32),
        "bias1": jnp.zeros((1, H), jnp.float32),
        "w2": jax.random.normal(keys[11], (H, D), jnp.float32) / jnp.sqrt(H),
        "bias2": jnp.zeros((1, D), jnp.float32),
    }

    loss = base_velocity_loss_forward(params, x0s, x1s, beta0s, beta1s, ts, zs)
    loss = jax.block_until_ready(loss)

    ref = jax.block_until_ready(
        reference_forward(params, x0s, x1s, beta0s, beta1s, ts, zs))

    assert jnp.isfinite(loss), "loss is not finite"
    assert jnp.allclose(loss, ref, rtol=1e-3, atol=1e-3), (loss, ref)
    print("KERNEL_OK")
</pallas_src>

<mosaic_0001>
module attributes {stable_mosaic.version = 11 : i64} {
  func.func @fused_velocity_loss_kernel(%arg0: i32, %arg1: memref<8x128xf32, #tpu.memory_space<vmem>>, %arg2: memref<8x128xf32, #tpu.memory_space<vmem>>, %arg3: memref<8x128xf32, #tpu.memory_space<vmem>>, %arg4: memref<8x3xf32, #tpu.memory_space<vmem>>, %arg5: memref<128x128xbf16, #tpu.memory_space<vmem>>, %arg6: memref<128x128xbf16, #tpu.memory_space<vmem>>, %arg7: memref<1x128xf32, #tpu.memory_space<vmem>>, %arg8: memref<1x128xf32, #tpu.memory_space<vmem>>, %arg9: memref<1x128xf32, #tpu.memory_space<vmem>>, %arg10: memref<1x128xf32, #tpu.memory_space<vmem>>, %arg11: memref<128x128xbf16, #tpu.memory_space<vmem>>, %arg12: memref<1x128xf32, #tpu.memory_space<vmem>>, %arg13: memref<8x1xf32, #tpu.memory_space<vmem>>) attributes {dimension_semantics = [#tpu.dimension_semantics<parallel>], iteration_bounds = array<i64: 1>, scalar_prefetch = 0 : i64, scratch_operands = 0 : i64, tpu.core_type = #tpu.core_type<tc>, window_params = [{transform_indices = @transform_0, window_bounds = array<i64: 8, 128>}, {transform_indices = @transform_1, window_bounds = array<i64: 8, 128>}, {transform_indices = @transform_2, window_bounds = array<i64: 8, 128>}, {transform_indices = @transform_3, window_bounds = array<i64: 8, 3>}, {pipeline_mode = #tpu.pipeline_mode<synchronous>, transform_indices = @transform_4, window_bounds = array<i64: 128, 128>}, {pipeline_mode = #tpu.pipeline_mode<synchronous>, transform_indices = @transform_5, window_bounds = array<i64: 128, 128>}, {pipeline_mode = #tpu.pipeline_mode<synchronous>, transform_indices = @transform_6, window_bounds = array<i64: 1, 128>}, {pipeline_mode = #tpu.pipeline_mode<synchronous>, transform_indices = @transform_7, window_bounds = array<i64: 1, 128>}, {pipeline_mode = #tpu.pipeline_mode<synchronous>, transform_indices = @transform_8, window_bounds = array<i64: 1, 128>}, {pipeline_mode = #tpu.pipeline_mode<synchronous>, transform_indices = @transform_9, window_bounds = array<i64: 1, 128>}, {pipeline_mode = #tpu.pipeline_mode<synchronous>, transform_indices = @transform_10, window_bounds = array<i64: 128, 128>}, {pipeline_mode = #tpu.pipeline_mode<synchronous>, transform_indices = @transform_11, window_bounds = array<i64: 1, 128>}, {transform_indices = @transform_12, window_bounds = array<i64: 8, 1>}]} {
    %c0 = arith.constant 0 : index
    %c0_0 = arith.constant 0 : index
    %0 = vector.load %arg1[%c0, %c0_0] : memref<8x128xf32, #tpu.memory_space<vmem>>, vector<8x128xf32>
    %c0_1 = arith.constant 0 : index
    %c0_2 = arith.constant 0 : index
    %1 = vector.load %arg2[%c0_1, %c0_2] : memref<8x128xf32, #tpu.memory_space<vmem>>, vector<8x128xf32>
    %c0_3 = arith.constant 0 : index
    %c0_4 = arith.constant 0 : index
    %2 = vector.load %arg3[%c0_3, %c0_4] : memref<8x128xf32, #tpu.memory_space<vmem>>, vector<8x128xf32>
    %c0_5 = arith.constant 0 : index
    %c0_6 = arith.constant 0 : index
    %3 = vector.load %arg4[%c0_5, %c0_6] : memref<8x3xf32, #tpu.memory_space<vmem>>, vector<8x3xf32>
    %4 = vector.extract_strided_slice %3 {offsets = [0, 0], sizes = [8, 1], strides = [1, 1]} : vector<8x3xf32> to vector<8x1xf32>
    %5 = vector.extract_strided_slice %3 {offsets = [0, 1], sizes = [8, 1], strides = [1, 1]} : vector<8x3xf32> to vector<8x1xf32>
    %6 = vector.extract_strided_slice %3 {offsets = [0, 2], sizes = [8, 1], strides = [1, 1]} : vector<8x3xf32> to vector<8x1xf32>
    %7 = arith.addf %5, %6 : vector<8x1xf32>
    %cst = arith.constant 5.000000e-01 : f32
    %8 = vector.broadcast %cst : f32 to vector<8x1xf32>
    %9 = arith.mulf %8, %7 : vector<8x1xf32>
    %10 = math.rsqrt %9 : vector<8x1xf32>
    %cst_7 = arith.constant 1.000000e+00 : f32
    %11 = vector.broadcast %cst_7 : f32 to vector<8x1xf32>
    %12 = arith.subf %11, %4 : vector<8x1xf32>
    %13 = arith.mulf %4, %12 : vector<8x1xf32>
    %14 = arith.mulf %13, %10 : vector<8x1xf32>
    %15 = vector.broadcast %14 : vector<8x1xf32> to vector<8x128xf32>
    %16 = arith.mulf %15, %2 : vector<8x128xf32>
    %cst_8 = arith.constant 2.000000e+00 : f32
    %17 = vector.broadcast %cst_8 : f32 to vector<8x1xf32>
    %18 = arith.mulf %17, %4 : vector<8x1xf32>
    %cst_9 = arith.constant 1.000000e+00 : f32
    %19 = vector.broadcast %cst_9 : f32 to vector<8x1xf32>
    %20 = arith.subf %19, %18 : vector<8x1xf32>
    %21 = arith.mulf %20, %10 : vector<8x1xf32>
    %22 = vector.broadcast %21 : vector<8x1xf32> to vector<8x128xf32>
    %23 = arith.mulf %22, %2 : vector<8x128xf32>
    %cst_10 = arith.constant 1.000000e+00 : f32
    %24 = vector.broadcast %cst_10 : f32 to vector<8x1xf32>
    %25 = arith.subf %24, %4 : vector<8x1xf32>
    %26 = vector.broadcast %25 : vector<8x1xf32> to vector<8x128xf32>
    %27 = arith.mulf %26, %0 : vector<8x128xf32>
    %28 = vector.broadcast %4 : vector<8x1xf32> to vector<8x128xf32>
    %29 = arith.mulf %28, %1 : vector<8x128xf32>
    %30 = arith.addf %27, %29 : vector<8x128xf32>
    %31 = arith.subf %1, %0 : vector<8x128xf32>
    %32 = arith.addf %30, %16 : vector<8x128xf32>
    %33 = arith.subf %30, %16 : vector<8x128xf32>
    %34 = tpu.concatenate %32, %33 in 0 : vector<8x128xf32>, vector<8x128xf32> -> vector<16x128xf32>
    %35 = arith.truncf %34 : vector<16x128xf32> to vector<16x128xbf16>
    %36 = arith.truncf %0 : vector<8x128xf32> to vector<8x128xbf16>
    %c0_11 = arith.constant 0 : index
    %c0_12 = arith.constant 0 : index
    %37 = vector.load %arg5[%c0_11, %c0_12] : memref<128x128xbf16, #tpu.memory_space<vmem>>, vector<128x128xbf16>
    %cst_13 = arith.constant dense<0.000000e+00> : vector<8x128xf32>
    %38 = tpu.matmul %36, %37, %cst_13 {dimension_numbers = #tpu.dot_dimension_numbers<[1], [0], [0], [1], [0, 0, 1, 1], [], []>} : vector<8x128xbf16>, vector<128x128xbf16>, vector<8x128xf32> -> vector<8x128xf32>
    %c0_14 = arith.constant 0 : index
    %c0_15 = arith.constant 0 : index
    %39 = vector.load %arg7[%c0_14, %c0_15] : memref<1x128xf32, #tpu.memory_space<vmem>>, vector<1x128xf32>
    %40 = vector.broadcast %4 : vector<8x1xf32> to vector<8x128xf32>
    %41 = vector.broadcast %39 : vector<1x128xf32> to vector<8x128xf32>
    %42 = arith.mulf %40, %41 : vector<8x128xf32>
    %43 = arith.addf %38, %42 : vector<8x128xf32>
    %c0_16 = arith.constant 0 : index
    %c0_17 = arith.constant 0 : index
    %44 = vector.load %arg8[%c0_16, %c0_17] : memref<1x128xf32, #tpu.memory_space<vmem>>, vector<1x128xf32>
    %45 = vector.broadcast %5 : vector<8x1xf32> to vector<8x128xf32>
    %46 = vector.broadcast %44 : vector<1x128xf32> to vector<8x128xf32>
    %47 = arith.mulf %45, %46 : vector<8x128xf32>
    %48 = arith.addf %43, %47 : vector<8x128xf32>
    %c0_18 = arith.constant 0 : index
    %c0_19 = arith.constant 0 : index
    %49 = vector.load %arg9[%c0_18, %c0_19] : memref<1x128xf32, #tpu.memory_space<vmem>>, vector<1x128xf32>
    %50 = vector.broadcast %6 : vector<8x1xf32> to vector<8x128xf32>
    %51 = vector.broadcast %49 : vector<1x128xf32> to vector<8x128xf32>
    %52 = arith.mulf %50, %51 : vector<8x128xf32>
    %53 = arith.addf %48, %52 : vector<8x128xf32>
    %c0_20 = arith.constant 0 : index
    %c0_21 = arith.constant 0 : index
    %54 = vector.load %arg10[%c0_20, %c0_21] : memref<1x128xf32, #tpu.memory_space<vmem>>, vector<1x128xf32>
    %55 = vector.broadcast %54 : vector<1x128xf32> to vector<8x128xf32>
    %56 = arith.addf %53, %55 : vector<8x128xf32>
    %c0_22 = arith.constant 0 : index
    %c0_23 = arith.constant 0 : index
    %57 = vector.load %arg6[%c0_22, %c0_23] : memref<128x128xbf16, #tpu.memory_space<vmem>>, vector<128x128xbf16>
    %cst_24 = arith.constant dense<0.000000e+00> : vector<16x128xf32>
    %58 = tpu.matmul %35, %57, %cst_24 {dimension_numbers = #tpu.dot_dimension_numbers<[1], [0], [0], [1], [0, 0, 1, 1], [], []>} : vector<16x128xbf16>, vector<128x128xbf16>, vector<16x128xf32> -> vector<16x128xf32>
    %59 = vector.shape_cast %58 : vector<16x128xf32> to vector<2x8x128xf32>
    %60 = vector.shape_cast %56 : vector<8x128xf32> to vector<1x8x128xf32>
    %61 = vector.broadcast %60 : vector<1x8x128xf32> to vector<2x8x128xf32>
    %62 = arith.addf %59, %61 : vector<2x8x128xf32>
    %63 = math.tanh %62 : vector<2x8x128xf32>
    %64 = arith.truncf %63 : vector<2x8x128xf32> to vector<2x8x128xbf16>
    %65 = vector.shape_cast %64 : vector<2x8x128xbf16> to vector<16x128xbf16>
    %c0_25 = arith.constant 0 : index
    %c0_26 = arith.constant 0 : index
    %66 = vector.load %arg11[%c0_25, %c0_26] : memref<128x128xbf16, #tpu.memory_space<vmem>>, vector<128x128xbf16>
    %cst_27 = arith.constant dense<0.000000e+00> : vector<16x128xf32>
    %67 = tpu.matmul %65, %66, %cst_27 {dimension_numbers = #tpu.dot_dimension_numbers<[1], [0], [0], [1], [0, 0, 1, 1], [], []>} : vector<16x128xbf16>, vector<128x128xbf16>, vector<16x128xf32> -> vector<16x128xf32>
    %c0_28 = arith.constant 0 : index
    %c0_29 = arith.constant 0 : index
    %68 = vector.load %arg12[%c0_28, %c0_29] : memref<1x128xf32, #tpu.memory_space<vmem>>, vector<1x128xf32>
    %69 = vector.broadcast %68 : vector<1x128xf32> to vector<16x128xf32>
    %70 = arith.addf %67, %69 : vector<16x128xf32>
    %71 = vector.extract_strided_slice %70 {offsets = [0, 0], sizes = [8, 128], strides = [1, 1]} : vector<16x128xf32> to vector<8x128xf32>
    %72 = vector.extract_strided_slice %70 {offsets = [8, 0], sizes = [8, 128], strides = [1, 1]} : vector<16x128xf32> to vector<8x128xf32>
    %73 = arith.mulf %71, %71 : vector<8x128xf32>
    %74 = arith.mulf %72, %72 : vector<8x128xf32>
    %75 = arith.addf %73, %74 : vector<8x128xf32>
    %cst_30 = arith.constant 2.500000e-01 : f32
    %76 = vector.broadcast %cst_30 : f32 to vector<8x128xf32>
    %77 = arith.mulf %76, %75 : vector<8x128xf32>
    %78 = arith.addf %71, %72 : vector<8x128xf32>
    %79 = arith.mulf %31, %78 : vector<8x128xf32>
    %80 = arith.subf %71, %72 : vector<8x128xf32>
    %81 = arith.mulf %23, %80 : vector<8x128xf32>
    %82 = arith.addf %79, %81 : vector<8x128xf32>
    %cst_31 = arith.constant 5.000000e-01 : f32
    %83 = vector.broadcast %cst_31 : f32 to vector<8x128xf32>
    %84 = arith.mulf %83, %82 : vector<8x128xf32>
    %85 = arith.subf %77, %84 : vector<8x128xf32>
    %cst_32 = arith.constant dense<0.000000e+00> : vector<8xf32>
    %86 = vector.multi_reduction <add>, %85, %cst_32 [1] : vector<8x128xf32> to vector<8xf32>
    %87 = vector.shape_cast %86 : vector<8xf32> to vector<8x1xf32>
    %c0_33 = arith.constant 0 : index
    %c0_34 = arith.constant 0 : index
    %88 = vector.load %arg13[%c0_33, %c0_34] : memref<8x1xf32, #tpu.memory_space<vmem>>, vector<8x1xf32>
    tpu.vector_store %arg13[%c0_33, %c0_34], %87 {strides = array<i32>} : memref<8x1xf32, #tpu.memory_space<vmem>>, vector<8x1xf32>,
    return
  }
  func.func @transform_0(%arg0: i32) -> (i32, i32) {
    %c0_i32 = arith.constant 0 : i32
    %c0_i32_0 = arith.constant 0 : i32
    return %arg0, %c0_i32 : i32, i32
  }
  func.func @transform_1(%arg0: i32) -> (i32, i32) {
    %c0_i32 = arith.constant 0 : i32
    %c0_i32_0 = arith.constant 0 : i32
    return %arg0, %c0_i32 : i32, i32
  }
  func.func @transform_2(%arg0: i32) -> (i32, i32) {
    %c0_i32 = arith.constant 0 : i32
    %c0_i32_0 = arith.constant 0 : i32
    return %arg0, %c0_i32 : i32, i32
  }
  func.func @transform_3(%arg0: i32) -> (i32, i32) {
    %c0_i32 = arith.constant 0 : i32
    %c0_i32_0 = arith.constant 0 : i32
    return %arg0, %c0_i32 : i32, i32
  }
  func.func @transform_4(%arg0: i32) -> (i32, i32) {
    %c0_i32 = arith.constant 0 : i32
    %c0_i32_0 = arith.constant 0 : i32
    %c0_i32_1 = arith.constant 0 : i32
    return %c0_i32, %c0_i32_0 : i32, i32
  }
  func.func @transform_5(%arg0: i32) -> (i32, i32) {
    %c0_i32 = arith.constant 0 : i32
    %c0_i32_0 = arith.constant 0 : i32
    %c0_i32_1 = arith.constant 0 : i32
    return %c0_i32, %c0_i32_0 : i32, i32
  }
  func.func @transform_6(%arg0: i32) -> (i32, i32) {
    %c0_i32 = arith.constant 0 : i32
    %c0_i32_0 = arith.constant 0 : i32
    %c0_i32_1 = arith.constant 0 : i32
    return %c0_i32, %c0_i32_0 : i32, i32
  }
  func.func @transform_7(%arg0: i32) -> (i32, i32) {
    %c0_i32 = arith.constant 0 : i32
    %c0_i32_0 = arith.constant 0 : i32
    %c0_i32_1 = arith.constant 0 : i32
    return %c0_i32, %c0_i32_0 : i32, i32
  }
  func.func @transform_8(%arg0: i32) -> (i32, i32) {
    %c0_i32 = arith.constant 0 : i32
    %c0_i32_0 = arith.constant 0 : i32
    %c0_i32_1 = arith.constant 0 : i32
    return %c0_i32, %c0_i32_0 : i32, i32
  }
  func.func @transform_9(%arg0: i32) -> (i32, i32) {
    %c0_i32 = arith.constant 0 : i32
    %c0_i32_0 = arith.constant 0 : i32
    %c0_i32_1 = arith.constant 0 : i32
    return %c0_i32, %c0_i32_0 : i32, i32
  }
  func.func @transform_10(%arg0: i32) -> (i32, i32) {
    %c0_i32 = arith.constant 0 : i32
    %c0_i32_0 = arith.constant 0 : i32
    %c0_i32_1 = arith.constant 0 : i32
    return %c0_i32, %c0_i32_0 : i32, i32
  }
  func.func @transform_11(%arg0: i32) -> (i32, i32) {
    %c0_i32 = arith.constant 0 : i32
    %c0_i32_0 = arith.constant 0 : i32
    %c0_i32_1 = arith.constant 0 : i32
    return %c0_i32, %c0_i32_0 : i32, i32
  }
  func.func @transform_12(%arg0: i32) -> (i32, i32) {
    %c0_i32 = arith.constant 0 : i32
    %c0_i32_0 = arith.constant 0 : i32
    return %arg0, %c0_i32 : i32, i32
  }
}

</mosaic_0001>

<bundles_post_ra>
// kernel: tpu_custom_call.1
= control target key start
LH: loop header
LB: loop body
LE: loop exit
PB: predicated region body
PF: predicated region fallthrough
CT: control target
= control target key end

     0   :  { %17 = vsyncpa [#allocation3], 0  ;;  %s884_s0 = inlined_call_operand.vmem [shape: f32[8,128], index: 0, kind: input, shape index: {}]   ;;  %s885_s1 = inlined_call_operand.hbm [shape: f32[8,128], index: 1, kind: input, shape index: {}]   ;;  %s886_s2 = inlined_call_operand.hbm [shape: f32[8,128], index: 2, kind: input, shape index: {}]   ;;  %s887_s3 = inlined_call_operand.vmem [shape: f32[8,3], index: 3, kind: input, shape index: {}]   ;;  %s888_s4 = inlined_call_operand.hbm [shape: bf16[128,128], index: 4, kind: input, shape index: {}]   ;;  %s889_s5 = inlined_call_operand.hbm [shape: bf16[128,128], index: 5, kind: input, shape index: {}]   ;;  %s890_s6 = inlined_call_operand.vmem [shape: f32[1,128], index: 6, kind: input, shape index: {}]   ;;  %s891_s7 = inlined_call_operand.vmem [shape: f32[1,128], index: 7, kind: input, shape index: {}]   ;;  %s892_s8 = inlined_call_operand.vmem [shape: f32[1,128], index: 8, kind: input, shape index: {}]   ;;  %s893_s9 = inlined_call_operand.vmem [shape: f32[1,128], index: 9, kind: input, shape index: {}]   ;;  %s894_s10 = inlined_call_operand.hbm [shape: bf16[128,128], index: 10, kind: input, shape index: {}]   ;;  %s895_s11 = inlined_call_operand.vmem [shape: f32[1,128], index: 11, kind: input, shape index: {}]   ;;  %s896_s12 = inlined_call_operand.vmem [shape: f32[8,1], index: 12, kind: output, shape index: {}]  }
   0x1   :  { %18 = vsyncpa [#allocation5], 0  ;;  %s38_s23 = sshll.u32 %s886_s2, 4  ;;  %s39_s23 = int_to_ptr.hbm [resolvable:$true] %s38_s23 }
   0x2   :  { %19 = vsyncpa [#allocation8], 0  ;;  %s747_s24 = smov [#allocation4]   ;;  %s63_s28 = sshll.u32 %s889_s5, 4  ;;  %s64_s28 = int_to_ptr.hbm [resolvable:$true] %s63_s28 }
   0x3   :  { %s40_s25 = sshll.u32 %s747_s24, 4  ;;  %s748_s29 = smov [#allocation7]   ;;  %s41_s25 = int_to_ptr.vmem [resolvable:$true] %s40_s25 }
   0x4   :  { %43 = dma.hbm_to_vmem [thread:$0]  %s39_s23, 128, %s41_s25, [#allocation5]  }
   0x5   :  { %s65_s30 = sshll.u32 %s748_s29, 4  ;;  %s27_s15 = sshll.u32 %s885_s1, 4  ;;  %s66_s30 = int_to_ptr.vmem [resolvable:$true] %s65_s30  ;;  %s28_s15 = int_to_ptr.hbm [resolvable:$true] %s27_s15 }
   0x6   :  { %s749_s2 = smov 64   ;;  %s750_s16 = smov 4  }
   0x7   :  { %71 = dma.hbm_to_vmem [thread:$0]  %s64_s28, 1024, %s66_s30, [#allocation8], %s749_s2, %s749_s2, %s750_s16  }
   0x8   :  { %s50_s19 = sshll.u32 %s888_s4, 4  ;;  %s751_s20 = smov [#allocation2]   ;;  %s51_s19 = int_to_ptr.hbm [resolvable:$true] %s50_s19 }
   0x9   :  { %s29_s21 = sshll.u32 %s751_s20, 4  ;;  %s752_s5 = smov [#allocation6]   ;;  %s30_s21 = int_to_ptr.vmem [resolvable:$true] %s29_s21 }
   0xa   :  { %32 = dma.hbm_to_vmem [thread:$0]  %s28_s15, 128, %s30_s21, [#allocation3]  }
   0xb   :  { %s52_s22 = sshll.u32 %s752_s5, 4  ;;  %s84_s1 = sshll.u32 %s894_s10, 4  ;;  %s53_s22 = int_to_ptr.vmem [resolvable:$true] %s52_s22  ;;  %s85_s1 = int_to_ptr.hbm [resolvable:$true] %s84_s1 }
   0xc   :  { %58 = dma.hbm_to_vmem [thread:$0]  %s51_s19, 1024, %s53_s22, [#allocation5], %s749_s2, %s749_s2, %s750_s16  }
   0xd   :  { %s753_s25 = smov [#allocation9]  }
   0xe   :  { %s86_s26 = sshll.u32 %s753_s25, 4  ;;  %s87_s26 = int_to_ptr.vmem [resolvable:$true] %s86_s26 }
   0xf   :  { %92 = dma.hbm_to_vmem [thread:$0]  %s85_s1, 1024, %s87_s26, [#allocation8], %s749_s2, %s749_s2, %s750_s16  }
  0x10   :  { %741 = dma.done.wait [#allocation3], 128  }
  0x11   :  { %742 = vsyncadd [#allocation3], 4294967168 }
  0x12   :  { %743 = dma.done.wait [#allocation5], 1152  }
  0x13   :  { %744 = vsyncadd [#allocation5], 4294966144 }
  0x14   :  { %745 = dma.done.wait [#allocation8], 2048  }
  0x15   :  { %746 = vsyncadd [#allocation8], 4294965248  ;;  %v841_v0 = vld [vmem:[%s887_s3] sm:$0xff]  ;;  %s754_s28 = smov 127   ;;  %v578_v1 = vld [vmem:[#allocation6 + $0x38] sm:$0xff]  ;;  %v755_v2 = vmov 0  }
  0x16   :  { %120 = vrot.lane.b32.xlu0 %v841_v0, %s754_s28  ;;  %606 = vset.pattern.permute.xlu1 %v755_v2  ;;  %v135_v3 = vsub.f32 1.0, %v841_v0  ;;  %v577_v4 = vld [vmem:[#allocation6 + $0x30] sm:$0xff]  ;;  %v756_v5 = vmov 2   ;;  %v576_v6 = vld [vmem:[#allocation6 + $0x28] sm:$0xff]  ;;  %v575_v9 = vld [vmem:[#allocation6 + $0x20] sm:$0xff]  ;;  %v148_v28 = vmul.f32 2.0, %v841_v0 }
  0x17   :  { %607 = vset.pattern.permute.xlu2 %v755_v2  ;;  %243 = vmatpush.bf16.msra.mxu0 %v578_v1  ;;  %v574_v11 = vld [vmem:[#allocation6 + $0x18] sm:$0xff]  ;;  %v573_v12 = vld [vmem:[#allocation6 + $0x10] sm:$0xff]  ;;  %v572_v15 = vld [vmem:[#allocation6 + $0x8] sm:$0xff]  ;;  %v757_v37 = vmov 1   ;;  %vm466_vm3 = vcmask 7168  }
  0x18   :  { %609 = vset.pattern.permute.xlu0 %v756_v5  ;;  %159 = vperm.xlu1 %606, %v135_v3   ;;  %v571_v18 = vld [vmem:[#allocation6] sm:$0xff]  ;;  %v851_v19 = vld [vmem:[%s884_s0] sm:$0xff]  ;;  %v586_v24 = vld [vmem:[#allocation7 + $0x38] sm:$0xff]  ;;  %v149_v30 = vsub.f32 1.0, %v148_v28  ;;  %v136_v31 = vmul.f32 %v135_v3, %v841_v0 }
  0x19   :  { %v173_v22 = vpack.c.bf16 %v851_v19, %v851_v19  ;;  %345 = vmatpush.bf16.msra.mxu1 %v586_v24  ;;  %v585_v25 = vld [vmem:[#allocation7 + $0x30] sm:$0xff]  ;;  %v584_v26 = vld [vmem:[#allocation7 + $0x28] sm:$0xff]  ;;  %v583_v27 = vld [vmem:[#allocation7 + $0x20] sm:$0xff] }
  0x1a   :  { %v582_v29 = vld [vmem:[#allocation7 + $0x18] sm:$0xff]  ;;  %v581_v32 = vld [vmem:[#allocation7 + $0x10] sm:$0xff]  ;;  %v580_v36 = vld [vmem:[#allocation7 + $0x8] sm:$0xff] }
  0x1b   :  { %244 = vmatpush.bf16.msra.mxu0 %v577_v4  ;;  %v579_v40 = vld [vmem:[#allocation7] sm:$0xff]  ;;  %v594_v42 = vld [vmem:[#allocation9 + $0x38] sm:$0xff]  ;;  %v860_v44 = vld [vmem:[#allocation2] sm:$0xff] }
  0x1c   :  { %439 = vmatpush.bf16.msra.mxu2 %v594_v42  ;;  %v593_v45 = vld [vmem:[#allocation9 + $0x30] sm:$0xff]  ;;  %v117_v48 = vld [vmem:[#allocation4] sm:$0xff]  ;;  %v592_v55 = vld [vmem:[#allocation9 + $0x28] sm:$0xff] }
  0x1d   :  { %346 = vmatpush.bf16.msra.mxu1 %v585_v25  ;;  %v591_v56 = vld [vmem:[#allocation9 + $0x20] sm:$0xff]  ;;  %v590_v57 = vld [vmem:[#allocation9 + $0x18] sm:$0xff]  ;;  %v589_v58 = vld [vmem:[#allocation9 + $0x10] sm:$0xff] }
  0x1e   :  { %v610_v59 = vld [vmem:[%s890_s6] ss:$0 sm:$0xff]  ;;  %v588_v60 = vld [vmem:[#allocation9 + $0x8] sm:$0xff] }
  0x1f   :  { %245 = vmatpush.bf16.msra.mxu0 %v576_v6  ;;  %v611_v61 = vld [vmem:[%s891_s7] ss:$0 sm:$0xff] }
  0x20   :  { %164 = vperm.xlu1 %606, %v841_v0   ;;  %440 = vmatpush.bf16.msra.mxu2 %v593_v45  ;;  %v612_v2 = vld [vmem:[%s892_s8] ss:$0 sm:$0xff] }
  0x21   :  { %347 = vmatpush.bf16.msra.mxu1 %v584_v26 }
  0x23   :  { %246 = vmatpush.bf16.msra.mxu0 %v575_v9 }
  0x24   :  { %441 = vmatpush.bf16.msra.mxu2 %v592_v55 }
  0x25   :  { %348 = vmatpush.bf16.msra.mxu1 %v583_v27  ;;  %v169_v27 = vsub.f32 %v860_v44, %v851_v19 }
  0x27   :  { %247 = vmatpush.bf16.msra.mxu0 %v574_v11 }
  0x28   :  { %442 = vmatpush.bf16.msra.mxu2 %v591_v56 }
  0x29   :  { %349 = vmatpush.bf16.msra.mxu1 %v582_v29 }
  0x2b   :  { %248 = vmatpush.bf16.msra.mxu0 %v573_v12 }
  0x2c   :  { %443 = vmatpush.bf16.msra.mxu2 %v590_v57 }
  0x2d   :  { %350 = vmatpush.bf16.msra.mxu1 %v581_v32 }
  0x2f   :  { %249 = vmatpush.bf16.msra.mxu0 %v572_v15 }
  0x30   :  { %444 = vmatpush.bf16.msra.mxu2 %v589_v58 }
  0x31   :  { %351 = vmatpush.bf16.msra.mxu1 %v580_v36 }
  0x33   :  { %250 = vmatpush.bf16.msra.mxu0 %v571_v18 }
  0x34   :  { %445 = vmatpush.bf16.msra.mxu2 %v588_v60 }
  0x35   :  { %352 = vmatpush.bf16.msra.mxu1 %v579_v40 }
  0x36   :  { %251 = vmatmul.bf16.vlgmr.msra.gmra.mxu0 %v173_v22 }
  0x88   :  { %v121_v7 = vpop.permute.xlu0 %120 }
  0x89   :  { %v123_v8 = vadd.f32 %v121_v7, %v841_v0 }
  0x8a   :  { %v160_v41 = vpop.permute.xlu1 %159 }
  0x8b   :  { %v124_v10 = vmul.f32 0.5, %v123_v8  ;;  %v162_v46 = vmul.f32 %v160_v41, %v851_v19  ;;  %v613_v8 = vld [vmem:[%s893_s9] ss:$0 sm:$0xff] }
  0x8d   :  { %615 = vrsqrt.f32 %v124_v10  ;;  %vm131_vm1 = vweird.f32 %v124_v10 }
  0x92   :  { %v165_v43 = vpop.permute.xlu1 %164 }
  0x93   :  { %v616_v13 = vpop.eup %615  ;;  %v167_v47 = vmul.f32 %v165_v43, %v860_v44  ;;  %v194_v63 = vmul.f32 %v610_v59, %v165_v43 }
  0x94   :  { %v126_v14 = vmul.f32 %v616_v13, %v124_v10  ;;  %vm132_vm0 = vweird.f32 %v616_v13 }
  0x95   :  { %vm133_vm2 = vmor %vm131_vm1, %vm132_vm0  ;;  %v168_v50 = vadd.f32 %v167_v47, %v162_v46 }
  0x96   :  { %v127_v16 = vmul.f32 %v616_v13, %v126_v14 }
  0x98   :  { %v128_v17 = vmul.f32 0.5, %v127_v16 }
  0x9a   :  { %v129_v20 = vsub.f32 1.5, %v128_v17 }
  0x9c   :  { %v130_v21 = vmul.f32 %v616_v13, %v129_v20 }
  0x9e   :  { %v134_v23 = vsel %vm133_vm2, %v616_v13, %v130_v21 }
  0x9f   :  { %138 = vrot.lane.b32.xlu0 %v134_v23, %s754_s28  ;;  %v614_v23 = vld [vmem:[%s895_s11] ss:$0 sm:$0xff] }
  0xa7   :  { %268 = vperm.xlu0 %609, %v841_v0  }
  0xb3   :  { %v252_v38 = vpop.f32.mrf.mxu0 }
  0xb4   :  { %v253_v4 = vadd.f32 %v252_v38, %v194_v63 }
  0xbb   :  { %v254_v39 = vpop.f32.mrf.mxu0 }
 0x111   :  { %v139_v33 = vpop.permute.xlu0 %138 }
 0x112   :  { %v150_v34 = vmul.f32 %v149_v30, %v139_v33  ;;  %v141_v35 = vmul.f32 %v139_v33, %v136_v31 }
 0x114   :  { %153 = vperm.xlu1 %606, %v150_v34   ;;  %144 = vperm.xlu2 %607, %v141_v35  }
 0x119   :  { %v269_v3 = vpop.permute.xlu0 %268 }
 0x11a   :  { %v274_v6 = vmul.f32 %v612_v2, %v269_v3 }
 0x11c   :  { %608 = vset.pattern.permute.xlu2 %v757_v37 }
 0x11d   :  { %258 = vperm.xlu2 %608, %v841_v0   ;;  %v587_v0 = vld [vmem:[#allocation9] sm:$0xff] }
 0x11e   :  { %446 = vmatpush.bf16.msra.mxu2 %v587_v0 }
 0x16e   :  { %v145_v49 = vpop.permute.xlu2 %144 }
 0x16f   :  { %v147_v51 = vmul.f32 %v145_v49, %v117_v48 }
 0x171   :  { %v170_v52 = vadd.f32 %v168_v50, %v147_v51  ;;  %v171_v53 = vsub.f32 %v168_v50, %v147_v51 }
 0x173   :  { %v172_v54 = vpack.c.bf16 %v171_v53, %v170_v52 }
 0x175   :  { %353 = vmatmul.bf16.vlgmr.msra.gmra.mxu1 %v172_v54 }
 0x177   :  { %v259_v62 = vpop.permute.xlu2 %258 }
 0x178   :  { %v264_v1 = vmul.f32 %v611_v61, %v259_v62 }
 0x17a   :  { %v265_v5 = vadd.f32 %v264_v1, %v253_v4 }
 0x17c   :  { %v275_v7 = vadd.f32 %v274_v6, %v265_v5 }
 0x17e   :  { %v280_v10 = vadd.f32 %v613_v8, %v275_v7 }
 0x186   :  { %v154_v24 = vpop.permute.xlu1 %153 }
 0x187   :  { %v156_v29 = vmul.f32 %v154_v24, %v117_v48 }
 0x1f2   :  { %v354_v9 = vpop.f32.mrf.mxu1 }
 0x1f3   :  { %v359_v11 = vadd.f32 %v354_v9, %v280_v10 }
 0x1f5   :  { %617 = vtanh.f32 %v359_v11 }
 0x1fa   :  { %v356_v12 = vpop.f32.mrf.mxu1 }
 0x1fb   :  { %v360_v13 = vadd.f32 %v356_v12, %v280_v10  ;;  %v618_v14 = vpop.eup %617 }
 0x1fc   :  { %v363_v15 = vpack.c.bf16 %v618_v14, %v618_v14 }
 0x1fd   :  { %619 = vtanh.f32 %v360_v13 }
 0x1fe   :  { %v387_v18 = vunpack.c.l.b16 %v363_v15 }
 0x203   :  { %v620_v16 = vpop.eup %619 }
 0x204   :  { %v364_v17 = vpack.c.bf16 %v620_v16, %v620_v16 }
 0x206   :  { %v388_v20 = vunpack.c.l.b16 %v364_v17 }
 0x208   :  { %v389_v21 = vpack.c.b16 %v388_v20, %v387_v18 }
 0x20a   :  { %447 = vmatmul.bf16.vlgmr.msra.gmra.mxu2 %v389_v21 }
 0x28d   :  { %v448_v22 = vpop.f32.mrf.mxu2 }
 0x28e   :  { %v449_v25 = vadd.f32 %v614_v23, %v448_v22 }
 0x290   :  { %v453_v30 = vmul.f32 %v449_v25, %v449_v25 }
 0x295   :  { %v450_v26 = vpop.f32.mrf.mxu2 }
 0x296   :  { %v451_v28 = vadd.f32 %v614_v23, %v450_v26 }
 0x298   :  { %v454_v31 = vmul.f32 %v451_v28, %v451_v28  ;;  %v457_v32 = vadd.f32 %v451_v28, %v449_v25  ;;  %v459_v33 = vsub.f32 %v449_v25, %v451_v28 }
 0x29a   :  { %v455_v34 = vadd.f32 %v454_v31, %v453_v30  ;;  %v458_v35 = vmul.f32 %v457_v32, %v169_v27  ;;  %v460_v36 = vmul.f32 %v459_v33, %v156_v29 }
 0x29c   :  { %v461_v37 = vadd.f32 %v460_v36, %v458_v35  ;;  %v456_v38 = vmul.f32 0.25, %v455_v34 }
 0x29e   :  { %v462_v39 = vmul.f32 0.5, %v461_v37 }
 0x2a0   :  { %v463_v40 = vsub.f32 %v456_v38, %v462_v39 }
 0x2a2   :  { %464 = vadd.xlane.f32.xlu2 %v463_v40 }
 0x315   :  { %v465_v41 = vpop.xlane.xlu2 %464 }
 0x316   :  { %467 = vst.msk [vmem:[%s896_s12] sm:$0xff] %vm466_vm3, %v465_v41 }
 0x317   :  { %472 = vsyncpa [#allocation3], 1 }
 0x318   :  { %473 = vsyncpa [#allocation5], 1 }
 0x319   :  { %474 = vsyncpa [#allocation8], 1 }

</bundles_post_ra>
